<compile_context>
chip_gen: v6e
topology: v6e:2x2x1
jax: 0.10.0
libtpu: 0.0.40
codegen_flags: <defaults>
</compile_context>

<pallas_src>
import functools

import jax
import jax.numpy as jnp
from jax.experimental import pallas as pl
from jax.experimental.pallas import tpu as pltpu


def _round_up(x, m):
    return (x + m - 1) // m * m


def _weighted_loss_kernel(pred_ref, tgt_ref, acc_ref, *,
                          loss_type, tile_m, tiles_per_core, total_rows):
    c = pl.program_id(0)   # core-parallel axis
    i = pl.program_id(1)   # reduction axis ("arbitrary")

    # Per-core accumulator lives in the VMEM-resident output block (same block
    # index for every i) -> zero it on the first reduction step of this core.
    @pl.when(i == 0)
    def _():
        acc_ref[...] = jnp.zeros_like(acc_ref)

    diff = pred_ref[...].astype(jnp.float32) - tgt_ref[...].astype(jnp.float32)
    if loss_type == "l2":
        elt = diff * diff
    elif loss_type == "l1":
        elt = jnp.abs(diff)
    else:
        raise ValueError(f"unsupported loss_type: {loss_type}")

    # Mask rows beyond the true batch size (ragged tail and clamped duplicate
    # blocks contribute exactly zero).
    row_start = (c * tiles_per_core + i) * tile_m
    valid = total_rows - row_start
    row_ids = jax.lax.broadcasted_iota(jnp.int32, (tile_m, 1), 0)
    elt = jnp.where(row_ids < valid, elt, 0.0)

    # Fold the (tile_m, D) tile into an (8, D) partial sum.  Axis 0 of the
    # reshaped array is not a layout axis, so this is just VPU vreg adds —
    # no per-step cross-lane (XLU) or scalar reduction on the critical path.
    d = elt.shape[-1]
    acc_ref[...] += jnp.sum(elt.reshape(tile_m // 8, 8, d), axis=0)


def weighted_loss(pred, target, weighted=1.0, *, loss_type="l2",
                  tile_m=1024, num_cores=2,
                  max_block_bytes=2 * 1024 * 1024):
    """Pallas equivalent of WeightedLoss.forward (l1 or l2 elementwise loss).

    pred, target: [batch, dim] arrays (same shape/dtype).
    weighted:     python / JAX scalar weight.
    Returns a float32 scalar: mean(loss * weighted).
    """
    assert pred.shape == target.shape and pred.ndim == 2
    assert pred.dtype == target.dtype
    M, D = pred.shape
    total_elems = M * D
    itemsize = jnp.dtype(pred.dtype).itemsize

    # Sublane packing unit of the input dtype (f32: 8, bf16: 16, int8/fp8: 32).
    unit = max(8, 8 * (4 // max(1, itemsize)))

    # Tiny-batch corner: pad rows with zeros so block layout constraints hold.
    # Zero rows in both inputs give zero diff, so the sum is unchanged.
    if M < unit:
        pad = unit - M
        pred = jnp.pad(pred, ((0, pad), (0, 0)))
        target = jnp.pad(target, ((0, pad), (0, 0)))
        M_pad = unit
    else:
        M_pad = M

    # Big, VMEM-safe blocks: amortize per-grid-step overhead while keeping
    # 2 inputs x 2 pipeline buffers comfortably inside even v7x's 64 MiB VMEM
    # (and the default scoped-VMEM limits on all generations).
    cap_rows = max(unit, (max_block_bytes // (D * itemsize)) // unit * unit)
    tile_m = min(_round_up(tile_m, unit), _round_up(M_pad, unit), cap_rows)

    total_tiles = pl.cdiv(M_pad, tile_m)
    tiles_per_core = pl.cdiv(total_tiles, num_cores)

    def in_map(c, i):
        # Clamp fully-out-of-range blocks onto the last real block; their
        # contribution is zeroed by the in-kernel row mask.
        return (jnp.minimum(c * tiles_per_core + i, total_tiles - 1), 0)

    kernel = functools.partial(
        _weighted_loss_kernel, loss_type=loss_type, tile_m=tile_m,
        tiles_per_core=tiles_per_core, total_rows=M)

    partials = pl.pallas_call(
        kernel,
        out_shape=jax.ShapeDtypeStruct((num_cores * 8, D), jnp.float32),
        grid_spec=pltpu.PrefetchScalarGridSpec(
            num_scalar_prefetch=0,
            grid=(num_cores, tiles_per_core),
            in_specs=[
                pl.BlockSpec((tile_m, D), in_map),   # pred tile
                pl.BlockSpec((tile_m, D), in_map),   # target tile
            ],
            # Per-core (8, D) accumulator: constant block across the reduction
            # axis, distinct block per core.
            out_specs=pl.BlockSpec((8, D), lambda c, i: (c, 0)),
        ),
        compiler_params=pltpu.CompilerParams(
            dimension_semantics=("parallel", "arbitrary")),
        cost_estimate=pl.CostEstimate(
            flops=3 * total_elems,
            transcendentals=0,
            bytes_accessed=2 * total_elems * itemsize + num_cores * 8 * D * 4),
    )(pred, target)

    # Finalize once: cross-lane/sublane/core reduction, weight multiply, and
    # mean scaling — all hoisted out of the hot loop.
    w = jnp.asarray(weighted, dtype=jnp.float32)
    return jnp.sum(partials) * w / jnp.float32(total_elems)


def weighted_l2_loss(pred, target, weighted=1.0, **kw):
    return weighted_loss(pred, target, weighted, loss_type="l2", **kw)


def weighted_l1_loss(pred, target, weighted=1.0, **kw):
    return weighted_loss(pred, target, weighted, loss_type="l1", **kw)


if __name__ == "__main__":
    key = jax.random.PRNGKey(0)
    k1, k2, k3, k4 = jax.random.split(key, 4)

    # [batch_size, dim] as in the WeightedLoss docstring.
    batch, dim = 16, 128
    pred = jax.random.normal(k1, (batch, dim), dtype=jnp.float32)
    target = jax.random.normal(k2, (batch, dim), dtype=jnp.float32)
    weighted = 0.5

    out_l2 = jax.block_until_ready(weighted_l2_loss(pred, target, weighted))
    ref_l2 = jnp.mean(((pred - target) ** 2) * weighted)
    assert jnp.allclose(out_l2, ref_l2, rtol=1e-5, atol=1e-6), (out_l2, ref_l2)

    out_l1 = jax.block_until_ready(weighted_l1_loss(pred, target, weighted))
    ref_l1 = jnp.mean(jnp.abs(pred - target) * weighted)
    assert jnp.allclose(out_l1, ref_l1, rtol=1e-5, atol=1e-6), (out_l1, ref_l1)

    # Ragged batch + non-128 feature dim exercises the masked-tail path.
    b2, d2 = 37, 96
    p2 = jax.random.normal(k3, (b2, d2), dtype=jnp.float32)
    t2 = jax.random.normal(k4, (b2, d2), dtype=jnp.float32)
    out2 = jax.block_until_ready(
        weighted_loss(p2, t2, 1.25, loss_type="l2", tile_m=16))
    ref2 = jnp.mean(((p2 - t2) ** 2) * 1.25)
    assert jnp.allclose(out2, ref2, rtol=1e-5, atol=1e-6), (out2, ref2)

    print("KERNEL_OK")
</pallas_src>

<mosaic_0001>
module attributes {stable_mosaic.version = 11 : i64} {
  func.func @_weighted_loss_kernel(%arg0: i32, %arg1: i32, %arg2: memref<16x128xf32, #tpu.memory_space<vmem>>, %arg3: memref<16x128xf32, #tpu.memory_space<vmem>>, %arg4: memref<8x128xf32, #tpu.memory_space<vmem>>) attributes {dimension_semantics = [#tpu.dimension_semantics<parallel>, #tpu.dimension_semantics<arbitrary>], iteration_bounds = array<i64: 2, 1>, scalar_prefetch = 0 : i64, scratch_operands = 0 : i64, tpu.core_type = #tpu.core_type<tc>, window_params = [{transform_indices = @transform_0, window_bounds = array<i64: 16, 128>}, {transform_indices = @transform_1, window_bounds = array<i64: 16, 128>}, {transform_indices = @transform_2, window_bounds = array<i64: 8, 128>}]} {
    %c0_i32 = arith.constant 0 : i32
    %0 = arith.cmpi eq, %arg1, %c0_i32 : i32
    %1 = arith.extui %0 : i1 to i32
    %c0_i32_0 = arith.constant 0 : i32
    %2 = arith.cmpi ne, %1, %c0_i32_0 : i32
    scf.if %2 {
      %cst_10 = arith.constant 0.000000e+00 : f32
      %23 = vector.broadcast %cst_10 : f32 to vector<8x128xf32>
      %c0_11 = arith.constant 0 : index
      %c0_12 = arith.constant 0 : index
      %24 = vector.load %arg4[%c0_11, %c0_12] : memref<8x128xf32, #tpu.memory_space<vmem>>, vector<8x128xf32>
      tpu.vector_store %arg4[%c0_11, %c0_12], %23 {strides = array<i32>} : memref<8x128xf32, #tpu.memory_space<vmem>>, vector<8x128xf32>,
    } else {
    }
    %c0 = arith.constant 0 : index
    %c0_1 = arith.constant 0 : index
    %3 = vector.load %arg2[%c0, %c0_1] : memref<16x128xf32, #tpu.memory_space<vmem>>, vector<16x128xf32>
    %c0_2 = arith.constant 0 : index
    %c0_3 = arith.constant 0 : index
    %4 = vector.load %arg3[%c0_2, %c0_3] : memref<16x128xf32, #tpu.memory_space<vmem>>, vector<16x128xf32>
    %5 = arith.subf %3, %4 : vector<16x128xf32>
    %6 = arith.mulf %5, %5 : vector<16x128xf32>
    %c1_i32 = arith.constant 1 : i32
    %7 = arith.muli %arg0, %c1_i32 : i32
    %8 = arith.addi %7, %arg1 : i32
    %c16_i32 = arith.constant 16 : i32
    %9 = arith.muli %8, %c16_i32 : i32
    %c16_i32_4 = arith.constant 16 : i32
    %10 = arith.subi %c16_i32_4, %9 : i32
    %11 = tpu.iota {dimensions = array<i32: 0>} : vector<16x1xi32>
    %12 = vector.broadcast %10 : i32 to vector<16x1xi32>
    %13 = arith.cmpi slt, %11, %12 : vector<16x1xi32>
    %cst = arith.constant 0.000000e+00 : f32
    %14 = vector.shape_cast %13 : vector<16x1xi1> to vector<16x1xi1>
    %15 = vector.broadcast %14 : vector<16x1xi1> to vector<16x128xi1>
    %16 = vector.broadcast %cst : f32 to vector<16x128xf32>
    %17 = arith.select %15, %6, %16 : vector<16x128xi1>, vector<16x128xf32>
    %c0_5 = arith.constant 0 : index
    %c0_6 = arith.constant 0 : index
    %18 = vector.load %arg4[%c0_5, %c0_6] : memref<8x128xf32, #tpu.memory_space<vmem>>, vector<8x128xf32>
    %19 = vector.shape_cast %17 : vector<16x128xf32> to vector<2x8x128xf32>
    %cst_7 = arith.constant dense<0.000000e+00> : vector<8x128xf32>
    %20 = vector.multi_reduction <add>, %19, %cst_7 [0] : vector<2x8x128xf32> to vector<8x128xf32>
    %21 = arith.addf %18, %20 : vector<8x128xf32>
    %c0_8 = arith.constant 0 : index
    %c0_9 = arith.constant 0 : index
    %22 = vector.load %arg4[%c0_8, %c0_9] : memref<8x128xf32, #tpu.memory_space<vmem>>, vector<8x128xf32>
    tpu.vector_store %arg4[%c0_8, %c0_9], %21 {strides = array<i32>} : memref<8x128xf32, #tpu.memory_space<vmem>>, vector<8x128xf32>,
    return
  }
  func.func @transform_0(%arg0: i32, %arg1: i32) -> (i32, i32) {
    %c1_i32 = arith.constant 1 : i32
    %0 = arith.muli %arg0, %c1_i32 : i32
    %1 = arith.addi %0, %arg1 : i32
    %c0_i32 = arith.constant 0 : i32
    %2 = arith.minsi %1, %c0_i32 : i32
    %c0_i32_0 = arith.constant 0 : i32
    %c0_i32_1 = arith.constant 0 : i32
    return %2, %c0_i32_0 : i32, i32
  }
  func.func @transform_1(%arg0: i32, %arg1: i32) -> (i32, i32) {
    %c1_i32 = arith.constant 1 : i32
    %0 = arith.muli %arg0, %c1_i32 : i32
    %1 = arith.addi %0, %arg1 : i32
    %c0_i32 = arith.constant 0 : i32
    %2 = arith.minsi %1, %c0_i32 : i32
    %c0_i32_0 = arith.constant 0 : i32
    %c0_i32_1 = arith.constant 0 : i32
    return %2, %c0_i32_0 : i32, i32
  }
  func.func @transform_2(%arg0: i32, %arg1: i32) -> (i32, i32) {
    %c0_i32 = arith.constant 0 : i32
    %c0_i32_0 = arith.constant 0 : i32
    return %arg0, %c0_i32 : i32, i32
  }
}

</mosaic_0001>

<bundles_post_ra>
// kernel: tpu_custom_call.1
= control target key start
LH: loop header
LB: loop body
LE: loop exit
PB: predicated region body
PF: predicated region fallthrough
CT: control target
= control target key end

     0   :  { %7 = vsyncpa [#allocation3], 0  ;;  %s864_s0 = inlined_call_operand.hbm [shape: f32[16,128], index: 0, kind: input, shape index: {}]   ;;  %s865_s1 = inlined_call_operand.hbm [shape: f32[16,128], index: 1, kind: input, shape index: {}]   ;;  %s866_s2 = inlined_call_operand.hbm [shape: f32[16,128], index: 2, kind: output, shape index: {}]  }
   0x1   :  { %9 = vsyncpa [#allocation3 + $0x1], 0 }
   0x2   :  { %10 = vsyncpa [#allocation6], 0 }
   0x3   :  { %12 = vsyncpa [#allocation6 + $0x1], 0 }
   0x4   :  { %13 = vsyncpa [#allocation4], 0 }
   0x5   :  { %15 = vsyncpa [#allocation4 + $0x1], 0  ;;  %s685_s9 = smov 0   ;;  %s687_s10 = smov 0  }
   0x6   :  { %s689_s11 = smov 0   ;;  %s691_s12 = smov 0  }
   0x7   :  { %s693_s13 = smov 0   ;;  %s695_s14 = smov 0  }
   0x8   :  { %s697_s15 = smov 0   ;;  %s699_s16 = smov 0  }
   0x9 LB: > { %s387_s17 = sadd.s32 4294967295, %s663_s16   ;;  %s388_s18 = sadd.s32 4294967294, %s663_s16   ;;  %s663_s16 = sphi %s699_s16, %s21_s16   ;;  %s659_s15 = sphi %s697_s15, %s885_s15   ;;  %s655_s14 = sphi %s695_s14, %s884_s14   ;;  %s651_s13 = sphi %s693_s13, %s854_s13   ;;  %s647_s12 = sphi %s691_s12, %s883_s12   ;;  %s643_s11 = sphi %s689_s11, %s882_s11   ;;  %s639_s10 = sphi %s687_s10, %s881_s10   ;;  %s635_s9 = sphi %s685_s9, %s880_s9  }
   0xa   : > { %s33_s19 = sadd.s32 1, %s659_s15  ;;  %p632_p1 = scmp.ne.s32.totalorder %s651_s13, 0 }
   0xb   : > { %p35_p0 = scmp.ge.s32.totalorder %s33_s19, 2  ;;  %p54_p2 = scmp.eq.s32.totalorder %s663_s16, 0 }
   0xc   : > { %p59_p3 = scmp.ne.s32.totalorder %s651_s13, %s647_s12  ;;  %p60_p5 = scmp.eq.s32.totalorder %s387_s17, 0 }
   0xd   : > { %s887_s19 = smov (%p35_p0, %s33_s19), 0  ;;  %p731_p4 = por %p632_p1, %p54_p2 }
   0xe   : > { %p735_p6 = por %p60_p5, %p59_p3  ;;  %s101_s22 = ssub.s32 %s659_s15, %s887_s19 }
   0xf   : > { %p102_p7 = scmp.eq.s32.totalorder %s101_s22, 0  ;;  %s104_s23 = sadd.s32 1, %s643_s11 }
  0x10   : > { %s870_s21 = scalar_select %p735_p6, 1, 0 }
  0x11   : > { %s743_s24 = scalar_select %p102_p7, %s643_s11, %s104_s23  }
  0x12   : > { %p114_p8 = scmp.ne.s32.totalorder %s643_s11, %s639_s10  ;;  %p115_p9 = scmp.eq.s32.totalorder %s387_s17, 1 }
  0x13   : > { %p120_p10 = scmp.ne.s32.totalorder %s639_s10, %s635_s9  ;;  %p121_p11 = scmp.eq.s32.totalorder %s388_s18, 1 }
  0x14   : > { %p749_p12 = por %p115_p9, %p114_p8  ;;  %p425_p1 = scmp.lt.s32.totalorder %s663_s16, 2 }
  0x15   : > { %p754_p0 = por %p121_p11, %p120_p10  ;;  %s665_s27 = smov [#allocation2]  }
  0x16   : > { %s871_s25 = scalar_select %p749_p12, 1, 0 }
  0x17   : > { %s872_s26 = scalar_select %p754_p0, 1, 0 }
  0x18   : > { %s155_s28 = sshll.u32 %s665_s27, 4  ;;  %p761_p2 = pnand %p425_p1, %p731_p4  ;;  %s156_s28 = int_to_ptr.vmem [resolvable:$true] %s155_s28 }
  0x19   : > { %s502_s4 = scalar_lea.hbm %s864_s0, 256 }
  0x1a   : > { %p503_p3 = scmp.ne.s32.totalorder %s864_s0, %s502_s4  ;;  %p504_p5 = pneg %p761_p2 }
  0x1b   : > { %p509_p8 = scmp.lt.s32.totalorder %s502_s4, %s502_s4 }
  0x1c   : > { %p505_p7 = pnand %p504_p5, %p503_p3 }
  0x1e   : > { %p506_p4 = pneg %p505_p7 }
  0x20   : > { %p511_p9 = pnand %p509_p8, %p506_p4 }
  0x22   : > { %514 = shalt.err (!%p511_p9)
}
  0x23   : > { %s515_s7 = scalar_lea.vmem %s156_s28, 256  ;;  %s522_s8 = scalar_lea.vmem %s156_s28, 512 }
  0x24   : > { %p516_p10 = scmp.ne.s32.totalorder %s156_s28, %s515_s7  ;;  %p523_p13 = scmp.lt.s32.totalorder %s156_s28, %s156_s28 }
  0x25   : > { %p524_p0 = scmp.lt.s32.totalorder %s522_s8, %s515_s7 }
  0x26   : > { %p518_p11 = pnand %p516_p10, %p504_p5 }
  0x27   : > { %p525_p12 = por %p524_p0, %p523_p13 }
  0x28   : > { %p519_p1 = pneg %p518_p11 }
  0x2a   : > { %p526_p6 = pnand %p525_p12, %p519_p1 }
  0x2c   : > { %529 = shalt.err (!%p526_p6)
}
  0x2d   : > { %s666_s12 = smov 128   ;;  %s667_s17 = smov 8  }
  0x2e   : > { %417 = dma.hbm_to_vmem [thread:$0]  (!%p761_p2), %s864_s0, 256, %s156_s28, [#allocation3], %s666_s12, %s666_s12, %s667_s17  }
  0x2f   : > { %p397_p3 = scmp.ge.s32.totalorder %s663_s16, 1  ;;  %p187_p7 = scmp.lt.s32.totalorder %s663_s16, 3 }
  0x30   : > { %s668_s23 = smov [#allocation5]   ;;  %s530_s4 = scalar_lea.hbm %s865_s1, 256 }
  0x31   : > { %p786_p4 = pnand %p397_p3, %p187_p7  ;;  %s179_s27 = sshll.u32 %s668_s23, 4  ;;  %s180_s27 = int_to_ptr.vmem [resolvable:$true] %s179_s27 }
  0x32   : > { %p531_p6 = scmp.ne.s32.totalorder %s865_s1, %s530_s4  ;;  %p537_p0 = scmp.lt.s32.totalorder %s530_s4, %s530_s4 }
  0x33   : > { %s874_s22 = scalar_select %p786_p4, 1, 0 }
  0x34   : > { %p533_p12 = pnand %p531_p6, %p504_p5 }
  0x36   : > { %p534_p13 = pneg %p533_p12 }
  0x38   : > { %p539_p8 = pnand %p537_p0, %p534_p13 }
  0x3a   : > { %542 = shalt.err (!%p539_p8)
}
  0x3b   : > { %s543_s28 = scalar_lea.vmem %s180_s27, 256  ;;  %s550_s7 = scalar_lea.vmem %s180_s27, 512 }
  0x3c   : > { %p544_p9 = scmp.ne.s32.totalorder %s180_s27, %s543_s28  ;;  %p551_p1 = scmp.lt.s32.totalorder %s180_s27, %s180_s27 }
  0x3d   : > { %p552_p3 = scmp.lt.s32.totalorder %s550_s7, %s543_s28 }
  0x3e   : > { %p546_p10 = pnand %p544_p9, %p504_p5 }
  0x3f   : > { %p553_p7 = por %p552_p3, %p551_p1 }
  0x40   : > { %p547_p11 = pneg %p546_p10 }
  0x42   : > { %p554_p4 = pnand %p553_p7, %p547_p11 }
  0x44   : > { %557 = shalt.err (!%p554_p4)
}
  0x45   : > { %420 = dma.hbm_to_vmem [thread:$0]  (!%p761_p2), %s865_s1, 256, %s180_s27, [#allocation6], %s666_s12, %s666_s12, %s667_s17  }
  0x46   : > { %p875_p6 = scmp.ne.s32.totalorder %s874_s22, 0 }
  0x47   : > { %s193_s20 = sand.u32 (!%p875_p6), 1, %s651_s13   ;;  %p876_p5 = scmp.ne.s32.totalorder (!%p875_p6), %s870_s21, 0 }
  0x48   : > { %191 = sbr.rel (%p875_p6) target bundleno = 107 (0x6b), region = 28  ;;  %s398_s23 = sshll.u32 (!%p875_p6), %s193_s20, 4 }
  0x49   : > { %s194_s30 = scalar_lea.sflag (!%p875_p6), [#allocation3], %s193_s20  ;;  %s197_s3 = scalar_lea.vmem (!%p875_p6), [#allocation2], %s398_s23 }
  0x4d   : > { %621 = dma.done.wait (%p876_p5), %s194_s30, 256  }
  0x4e   : > { %623 = vsyncadd (%p876_p5), %s194_s30, 4294967040  ;;  %s203_s29 = scalar_lea.sflag [#allocation6], %s193_s20  ;;  %s206_s4 = scalar_lea.vmem [#allocation5], %s398_s23 }
  0x4f   : > { %625 = dma.done.wait (%p876_p5), %s203_s29, 256  }
  0x50   : > { %627 = vsyncadd (%p876_p5), %s203_s29, 4294967040  ;;  %s401_s12 = sshll.u32 %s655_s14, 4  ;;  %v256_v0 = vlaneseq  ;;  %s229_s22 = sand.u32 1, %s639_s10   ;;  %v245_v4 = vld [vmem:[%s197_s3] sm:$0xff]  ;;  %v246_v5 = vld [vmem:[%s197_s3 + $0x8] sm:$0xff] }
  0x51   : > { %s255_s17 = ssub.s32 16, %s401_s12  ;;  %s400_s27 = sshll.u32 %s229_s22, 3  ;;  %v247_v6 = vld [vmem:[%s206_s4] sm:$0xff]  ;;  %v248_v7 = vld [vmem:[%s206_s4 + $0x8] sm:$0xff] }
  0x52   : > { %v257_v1 = vshrl.u32 %v256_v0, 7  ;;  %v259_v3 = vstv %s255_s17  ;;  %v249_v8 = vsub.f32 %v245_v4, %v247_v6  ;;  %v250_v9 = vsub.f32 %v246_v5, %v248_v7  ;;  %s403_s21 = sshll.u32 %s655_s14, 7  ;;  %s231_s5 = scalar_lea.vmem [#allocation7], %s400_s27 }
  0x53   : > { %s286_s6 = sshll.u32 %s231_s5, 4  ;;  %s284_s8 = scalar_lea.hbm %s866_s2, %s403_s21  ;;  %s287_s6 = int_to_ptr.vmem [resolvable:$true] %s286_s6 }
  0x54   : > { %v258_v2 = vadd.s32 8, %v257_v1  ;;  %vm260_vm0 = vcmp.lt.s32.totalorder %v257_v1, %v259_v3  ;;  %v251_v10 = vmul.f32 %v249_v8, %v249_v8  ;;  %v252_v11 = vmul.f32 %v250_v9, %v250_v9  ;;  %s273_s18 = scalar_lea.sflag [#allocation4], %s229_s22  ;;  %s558_s20 = scalar_lea.vmem %s287_s6, 128 }
  0x55   : > { %p559_p2 = scmp.ne.s32.totalorder %s287_s6, %s558_s20  ;;  %p877_p4 = scmp.ne.s32.totalorder %s871_s25, 0 }
  0x56   : > { %vm261_vm1 = vcmp.lt.s32.totalorder %v258_v2, %v259_v3  ;;  %v266_v12 = vsel %vm260_vm0, %v251_v10, 0.0  ;;  %s669_s23 = smov [#allocation7]  }
  0x57   : > { %v267_v13 = vsel %vm261_vm1, %v252_v11, 0.0  ;;  %p560_p12 = pnand %p559_p2, %p877_p4  ;;  %s562_s30 = sshll.u32 %s669_s23, 4  ;;  %s563_s30 = int_to_ptr.vmem [resolvable:$false] %s562_s30 }
  0x58   : > { %v269_v14 = vadd.f32 %v267_v13, %v266_v12  ;;  %s564_s3 = scalar_lea.vmem %s563_s30, 256  ;;  %p565_p0 = scmp.lt.s32.totalorder %s287_s6, %s563_s30 }
  0x59   : > { %p561_p13 = pneg %p560_p12  ;;  %p566_p8 = scmp.lt.s32.totalorder %s564_s3, %s558_s20 }
  0x5a   : > { %271 = vst [vmem:[%s231_s5] sm:$0xff] %v269_v14 }
  0x5b   : > { %p567_p9 = por %p566_p8, %p565_p0 }
  0x5d   : > { %p568_p10 = pnand %p567_p9, %p561_p13 }
  0x5f   : > { %571 = shalt.err (!%p568_p10)
}
  0x60   : > { %s572_s14 = scalar_lea.hbm %s284_s8, 128  ;;  %s576_s12 = scalar_lea.hbm %s866_s2, 256 }
  0x61   : > { %p573_p11 = scmp.ne.s32.totalorder %s284_s8, %s572_s14  ;;  %p577_p7 = scmp.lt.s32.totalorder %s284_s8, %s866_s2 }
  0x62   : > { %p578_p6 = scmp.lt.s32.totalorder %s576_s12, %s572_s14 }
  0x63   : > { %p574_p1 = pnand %p573_p11, %p877_p4 }
  0x64   : > { %p579_p5 = por %p578_p6, %p577_p7 }
  0x65   : > { %p575_p3 = pneg %p574_p1 }
  0x67   : > { %p580_p2 = pnand %p579_p5, %p575_p3 }
  0x69   : > { %583 = shalt.err (!%p580_p2)
}
  0x6a   : > { %412 = dma.vmem_to_hbm [thread:$0]  (%p877_p4), %s287_s6, 128, %s284_s8, %s273_s18  }
  0x6b PF: > { %s298_s27 = sand.u32 1, %s635_s9   ;;  %p878_p12 = scmp.ne.s32.totalorder %s872_s26, 0 }
  0x6c   : > { %p879_p13 = scmp.ge.s32.totalorder %s663_s16, 2  ;;  %s299_s21 = scalar_lea.sflag [#allocation4], %s298_s27 }
  0x6e   : > { %p422_p0 = pnand %p879_p13, %p878_p12 }
  0x70   : > { %p423_p8 = pneg %p422_p0 }
  0x72   : > { %629 = dma.done.wait (%p423_p8), %s299_s21, 128  }
  0x73   : > { %631 = vsyncadd (%p423_p8), %s299_s21, 4294967168  ;;  %s21_s16 = sadd.s32 1, %s663_s16   ;;  %s880_s9 = smov %s639_s10 }
  0x74   : > { %p18_p9 = scmp.ge.s32.totalorder %s21_s16, 4   ;;  %s881_s10 = smov %s643_s11 }
  0x75   : > { %s882_s11 = smov %s743_s24  ;;  %s883_s12 = smov %s651_s13 }
  0x76   : > { %s854_s13 = smov 0   ;;  %s884_s14 = smov %s659_s15 }
  0x77   : > { %s885_s15 = smov %s887_s19  ;;  %20 = sbr.rel (!%p18_p9) target bundleno = 9 (0x9), region = 90 }
  0x7c   :  { %304 = vsyncpa [#allocation3], 1 }
  0x7d   :  { %306 = vsyncpa [#allocation3 + $0x1], 1 }
  0x7e   :  { %307 = vsyncpa [#allocation6], 1 }
  0x7f   :  { %309 = vsyncpa [#allocation6 + $0x1], 1 }
  0x80   :  { %310 = vsyncpa [#allocation4], 1 }
  0x81   :  { %312 = vsyncpa [#allocation4 + $0x1], 1 }

</bundles_post_ra>
